<compile_context>
chip_gen: v5e
topology: v5e:2x2
jax: 0.10.0
libtpu: 0.0.40
codegen_flags: <defaults>
</compile_context>

<pallas_src>
import jax
import jax.numpy as jnp
from jax.experimental import pallas as pl
from jax.experimental.pallas import tpu as pltpu


def _round_up(x, m):
    return (x + m - 1) // m * m


def mlp_kernel(u_ref, i_ref, w1u_ref, w1i_ref, b1_ref, w2_ref, b2_ref,
               w3_ref, b3_ref, o_ref):
    # u_ref / i_ref: (TB, E) bf16 tiles of the gathered embedding rows.
    # fc1 + ReLU: W1 pre-split into user/item halves -> no (TB, 2E) concat copy.
    h1 = (jnp.dot(u_ref[...], w1u_ref[...], preferred_element_type=jnp.float32)
          + jnp.dot(i_ref[...], w1i_ref[...], preferred_element_type=jnp.float32)
          + b1_ref[...])
    h1 = jnp.maximum(h1, 0.0)

    # fc2 + ReLU (bf16 operands, f32 accumulation / epilogue).
    h2 = jnp.dot(h1.astype(jnp.bfloat16), w2_ref[...],
                 preferred_element_type=jnp.float32) + b2_ref[...]
    h2 = jnp.maximum(h2, 0.0)

    # fc3 (K=32, N=1): VPU broadcast-multiply + lane reduction (MXU would be wasted).
    h3 = jnp.sum(h2 * w3_ref[...], axis=-1, keepdims=True) + b3_ref[...]   # (TB, 1)

    # sigmoid * 4 + 1 epilogue in f32.
    y = jax.nn.sigmoid(h3) * 4.0 + 1.0                                     # (TB, 1)

    # Lane-dense store: relayout the (TB, 1) column to a (1, 1, TB) row so the
    # writeback is dense vst instead of TB/8 masked single-lane partial stores.
    tb = y.shape[0]
    o_ref[...] = y.reshape(1, 1, tb)


def xavier_uniform(key, out_features, in_features):
    # Matches nn.init.xavier_uniform_ bound for a (out, in) torch weight;
    # returned already transposed to (in, out) for the kernel.
    bound = jnp.sqrt(6.0 / (in_features + out_features))
    w = jax.random.uniform(key, (out_features, in_features),
                           minval=-bound, maxval=bound, dtype=jnp.float32)
    return w.T


def linear_bias(key, out_features, in_features):
    # PyTorch nn.Linear default bias init: U(-1/sqrt(fan_in), 1/sqrt(fan_in)).
    bound = 1.0 / jnp.sqrt(jnp.float32(in_features))
    return jax.random.uniform(key, (1, out_features),
                              minval=-bound, maxval=bound, dtype=jnp.float32)


def init_params(key, num_users, num_items, embedding_dim=128):
    """f32 master parameters (mirrors the PyTorch init scheme)."""
    ks = jax.random.split(key, 8)
    bound_u = jnp.sqrt(6.0 / (num_users + embedding_dim))
    bound_i = jnp.sqrt(6.0 / (num_items + embedding_dim))
    return {
        "user_emb": jax.random.uniform(ks[0], (num_users, embedding_dim),
                                       minval=-bound_u, maxval=bound_u,
                                       dtype=jnp.float32),
        "item_emb": jax.random.uniform(ks[1], (num_items, embedding_dim),
                                       minval=-bound_i, maxval=bound_i,
                                       dtype=jnp.float32),
        "w1": xavier_uniform(ks[2], 64, embedding_dim * 2),   # (2E, 64)
        "b1": linear_bias(ks[3], 64, embedding_dim * 2),      # (1, 64)
        "w2": xavier_uniform(ks[4], 32, 64),                  # (64, 32)
        "b2": linear_bias(ks[5], 32, 64),                     # (1, 32)
        "w3": xavier_uniform(ks[6], 1, 32),                   # (32, 1)
        "b3": linear_bias(ks[7], 1, 32),                      # (1, 1)
    }


def prepare_params(params, embedding_dim=128):
    """One-time inference preparation: bf16 tables/weights at rest, W1 split.

    Done once outside the hot path so no full-table cast happens per forward.
    """
    E = embedding_dim
    return {
        "user_emb": params["user_emb"].astype(jnp.bfloat16),   # (U, E) bf16
        "item_emb": params["item_emb"].astype(jnp.bfloat16),   # (I, E) bf16
        "w1u": params["w1"][:E].astype(jnp.bfloat16),          # (E, 64) bf16
        "w1i": params["w1"][E:].astype(jnp.bfloat16),           # (E, 64) bf16
        "b1": params["b1"],                                     # (1, 64) f32
        "w2": params["w2"].astype(jnp.bfloat16),                # (64, 32) bf16
        "b2": params["b2"],                                     # (1, 32) f32
        "w3": params["w3"].reshape(1, -1),                      # (1, 32) f32
        "b3": params["b3"].reshape(1, 1),                       # (1, 1)  f32
    }


def net_forward(x, params, embedding_dim=128, block_b=4096):
    """x: (B, 2) integer tensor of [user_idx, item_idx] pairs. Returns (B, 1) f32.

    `params` must come from prepare_params().
    """
    user_idx = x[:, 0].astype(jnp.int32)
    item_idx = x[:, 1].astype(jnp.int32)

    B = int(user_idx.shape[0])
    E = embedding_dim

    # Batch tile: multiple of 16 rows (bf16 sublane packing friendly).
    tb = min(block_b, _round_up(B, 16))
    # Prefer >= 2 grid steps so both v7x TensorCores get work (no-op on v5e/v6e).
    if B > 16 and _round_up(B, tb) // tb < 2:
        tb = _round_up((B + 1) // 2, 16)
    B_pad = _round_up(B, tb)
    num_tiles = B_pad // tb

    # Pad the cheap 4-byte index vectors (row 0 is always a valid table row),
    # NOT the gathered (B, E) embedding arrays.
    if B_pad != B:
        user_idx = jnp.pad(user_idx, (0, B_pad - B))
        item_idx = jnp.pad(item_idx, (0, B_pad - B))

    # Embedding lookup (bf16 tables at rest -> bf16 gathered rows).
    u = params["user_emb"][user_idx]     # (B_pad, E) bf16
    it = params["item_emb"][item_idx]    # (B_pad, E) bf16

    w1u, w1i = params["w1u"], params["w1i"]
    b1, w2, b2 = params["b1"], params["w2"], params["b2"]
    w3, b3 = params["w3"], params["b3"]

    flops = 2 * B_pad * (2 * E * 64 + 64 * 32 + 32)
    bytes_accessed = (B_pad * 2 * E * 2                 # bf16 embedding tiles
                      + (2 * E * 64 + 64 * 32) * 2      # bf16 weights
                      + (64 + 32 + 32 + 1) * 4          # f32 biases / w3
                      + B_pad * 4)                      # f32 output

    out = pl.pallas_call(
        mlp_kernel,
        out_shape=jax.ShapeDtypeStruct((num_tiles, 1, tb), jnp.float32),
        grid=(num_tiles,),
        in_specs=[
            pl.BlockSpec((tb, E), lambda b: (b, 0)),        # user tile (pipelined)
            pl.BlockSpec((tb, E), lambda b: (b, 0)),        # item tile (pipelined)
            pl.BlockSpec((E, 64), lambda b: (0, 0)),        # W1 user half (resident)
            pl.BlockSpec((E, 64), lambda b: (0, 0)),        # W1 item half (resident)
            pl.BlockSpec((1, 64), lambda b: (0, 0)),        # b1
            pl.BlockSpec((64, 32), lambda b: (0, 0)),       # W2
            pl.BlockSpec((1, 32), lambda b: (0, 0)),        # b2
            pl.BlockSpec((1, 32), lambda b: (0, 0)),        # w3 row
            pl.BlockSpec((1, 1), lambda b: (0, 0)),         # b3 scalar
        ],
        out_specs=pl.BlockSpec((1, 1, tb), lambda b: (b, 0, 0)),
        compiler_params=pltpu.CompilerParams(
            dimension_semantics=("parallel",)),
        cost_estimate=pl.CostEstimate(
            flops=flops, transcendentals=B_pad, bytes_accessed=bytes_accessed),
    )(u, it, w1u, w1i, b1, w2, b2, w3, b3)

    # (num_tiles, 1, tb) row-major flatten restores original batch order.
    return out.reshape(-1)[:B][:, None]


def net_forward_ref(x, params):
    """Pure-JAX f32 reference (master params) for correctness checking."""
    user_idx = x[:, 0].astype(jnp.int32)
    item_idx = x[:, 1].astype(jnp.int32)
    u = params["user_emb"][user_idx]
    it = params["item_emb"][item_idx]
    h = jnp.concatenate([u, it], axis=1)
    h = jnp.maximum(h @ params["w1"] + params["b1"], 0.0)
    h = jnp.maximum(h @ params["w2"] + params["b2"], 0.0)
    h = h @ params["w3"] + params["b3"]
    return jax.nn.sigmoid(h) * 4.0 + 1.0


if __name__ == "__main__":
    num_users, num_items, embedding_dim = 8, 10, 128

    key = jax.random.PRNGKey(0)
    pkey, ukey, ikey = jax.random.split(key, 3)
    params = init_params(pkey, num_users, num_items, embedding_dim)
    prep = prepare_params(params, embedding_dim)

    # --- Test 1: tiny batch (single tile) --------------------------------
    batch = 8
    user_idx = jax.random.randint(ukey, (batch,), 0, num_users)
    item_idx = jax.random.randint(ikey, (batch,), 0, num_items)
    x = jnp.stack([user_idx, item_idx], axis=1)            # (B, 2) int32

    out = net_forward(x, prep, embedding_dim)
    jax.block_until_ready(out)

    assert out.shape == (batch, 1)
    # sigmoid*4+1 must lie in (1, 5)
    assert bool(jnp.all(out > 1.0)) and bool(jnp.all(out < 5.0))
    ref = net_forward_ref(x, params)
    assert bool(jnp.max(jnp.abs(out - ref)) < 1e-1)        # bf16-tolerant

    # --- Test 2: multi-tile grid + index padding path --------------------
    batch2 = 200
    k2, k3 = jax.random.split(jax.random.PRNGKey(1))
    x2 = jnp.stack([jax.random.randint(k2, (batch2,), 0, num_users),
                    jax.random.randint(k3, (batch2,), 0, num_items)], axis=1)
    out2 = net_forward(x2, prep, embedding_dim, block_b=64)
    jax.block_until_ready(out2)

    assert out2.shape == (batch2, 1)
    ref2 = net_forward_ref(x2, params)
    assert bool(jnp.max(jnp.abs(out2 - ref2)) < 1e-1)

    print("KERNEL_OK")
</pallas_src>

<mosaic_0001>
module attributes {stable_mosaic.version = 11 : i64} {
  func.func @mlp_kernel(%arg0: i32, %arg1: memref<16x128xbf16, #tpu.memory_space<vmem>>, %arg2: memref<16x128xbf16, #tpu.memory_space<vmem>>, %arg3: memref<128x64xbf16, #tpu.memory_space<vmem>>, %arg4: memref<128x64xbf16, #tpu.memory_space<vmem>>, %arg5: memref<1x64xf32, #tpu.memory_space<vmem>>, %arg6: memref<64x32xbf16, #tpu.memory_space<vmem>>, %arg7: memref<1x32xf32, #tpu.memory_space<vmem>>, %arg8: memref<1x32xf32, #tpu.memory_space<vmem>>, %arg9: memref<1x1xf32, #tpu.memory_space<vmem>>, %arg10: memref<1x1x16xf32, #tpu.memory_space<vmem>>) attributes {dimension_semantics = [#tpu.dimension_semantics<parallel>], iteration_bounds = array<i64: 1>, scalar_prefetch = 0 : i64, scratch_operands = 0 : i64, tpu.core_type = #tpu.core_type<tc>, window_params = [{transform_indices = @transform_0, window_bounds = array<i64: 16, 128>}, {transform_indices = @transform_1, window_bounds = array<i64: 16, 128>}, {pipeline_mode = #tpu.pipeline_mode<synchronous>, transform_indices = @transform_2, window_bounds = array<i64: 128, 64>}, {pipeline_mode = #tpu.pipeline_mode<synchronous>, transform_indices = @transform_3, window_bounds = array<i64: 128, 64>}, {pipeline_mode = #tpu.pipeline_mode<synchronous>, transform_indices = @transform_4, window_bounds = array<i64: 1, 64>}, {pipeline_mode = #tpu.pipeline_mode<synchronous>, transform_indices = @transform_5, window_bounds = array<i64: 64, 32>}, {pipeline_mode = #tpu.pipeline_mode<synchronous>, transform_indices = @transform_6, window_bounds = array<i64: 1, 32>}, {pipeline_mode = #tpu.pipeline_mode<synchronous>, transform_indices = @transform_7, window_bounds = array<i64: 1, 32>}, {pipeline_mode = #tpu.pipeline_mode<synchronous>, transform_indices = @transform_8, window_bounds = array<i64: 1, 1>}, {transform_indices = @transform_9, window_bounds = array<i64: 1, 1, 16>}]} {
    %c0 = arith.constant 0 : index
    %c0_0 = arith.constant 0 : index
    %0 = vector.load %arg1[%c0, %c0_0] : memref<16x128xbf16, #tpu.memory_space<vmem>>, vector<16x128xbf16>
    %c0_1 = arith.constant 0 : index
    %c0_2 = arith.constant 0 : index
    %1 = vector.load %arg3[%c0_1, %c0_2] : memref<128x64xbf16, #tpu.memory_space<vmem>>, vector<128x64xbf16>
    %cst = arith.constant dense<0.000000e+00> : vector<16x64xf32>
    %2 = tpu.matmul %0, %1, %cst {dimension_numbers = #tpu.dot_dimension_numbers<[1], [0], [0], [1], [0, 0, 1, 1], [], []>} : vector<16x128xbf16>, vector<128x64xbf16>, vector<16x64xf32> -> vector<16x64xf32>
    %c0_3 = arith.constant 0 : index
    %c0_4 = arith.constant 0 : index
    %3 = vector.load %arg2[%c0_3, %c0_4] : memref<16x128xbf16, #tpu.memory_space<vmem>>, vector<16x128xbf16>
    %c0_5 = arith.constant 0 : index
    %c0_6 = arith.constant 0 : index
    %4 = vector.load %arg4[%c0_5, %c0_6] : memref<128x64xbf16, #tpu.memory_space<vmem>>, vector<128x64xbf16>
    %cst_7 = arith.constant dense<0.000000e+00> : vector<16x64xf32>
    %5 = tpu.matmul %3, %4, %cst_7 {dimension_numbers = #tpu.dot_dimension_numbers<[1], [0], [0], [1], [0, 0, 1, 1], [], []>} : vector<16x128xbf16>, vector<128x64xbf16>, vector<16x64xf32> -> vector<16x64xf32>
    %6 = arith.addf %2, %5 : vector<16x64xf32>
    %c0_8 = arith.constant 0 : index
    %c0_9 = arith.constant 0 : index
    %7 = vector.load %arg5[%c0_8, %c0_9] : memref<1x64xf32, #tpu.memory_space<vmem>>, vector<1x64xf32>
    %8 = vector.broadcast %7 : vector<1x64xf32> to vector<16x64xf32>
    %9 = arith.addf %6, %8 : vector<16x64xf32>
    %cst_10 = arith.constant 0.000000e+00 : f32
    %10 = vector.broadcast %cst_10 : f32 to vector<16x64xf32>
    %11 = arith.maximumf %9, %10 : vector<16x64xf32>
    %12 = arith.truncf %11 : vector<16x64xf32> to vector<16x64xbf16>
    %c0_11 = arith.constant 0 : index
    %c0_12 = arith.constant 0 : index
    %13 = vector.load %arg6[%c0_11, %c0_12] : memref<64x32xbf16, #tpu.memory_space<vmem>>, vector<64x32xbf16>
    %cst_13 = arith.constant dense<0.000000e+00> : vector<16x32xf32>
    %14 = tpu.matmul %12, %13, %cst_13 {dimension_numbers = #tpu.dot_dimension_numbers<[1], [0], [0], [1], [0, 0, 1, 1], [], []>} : vector<16x64xbf16>, vector<64x32xbf16>, vector<16x32xf32> -> vector<16x32xf32>
    %c0_14 = arith.constant 0 : index
    %c0_15 = arith.constant 0 : index
    %15 = vector.load %arg7[%c0_14, %c0_15] : memref<1x32xf32, #tpu.memory_space<vmem>>, vector<1x32xf32>
    %16 = vector.broadcast %15 : vector<1x32xf32> to vector<16x32xf32>
    %17 = arith.addf %14, %16 : vector<16x32xf32>
    %cst_16 = arith.constant 0.000000e+00 : f32
    %18 = vector.broadcast %cst_16 : f32 to vector<16x32xf32>
    %19 = arith.maximumf %17, %18 : vector<16x32xf32>
    %c0_17 = arith.constant 0 : index
    %c0_18 = arith.constant 0 : index
    %20 = vector.load %arg8[%c0_17, %c0_18] : memref<1x32xf32, #tpu.memory_space<vmem>>, vector<1x32xf32>
    %21 = vector.broadcast %20 : vector<1x32xf32> to vector<16x32xf32>
    %22 = arith.mulf %19, %21 : vector<16x32xf32>
    %cst_19 = arith.constant dense<0.000000e+00> : vector<16xf32>
    %23 = vector.multi_reduction <add>, %22, %cst_19 [1] : vector<16x32xf32> to vector<16xf32>
    %24 = vector.shape_cast %23 : vector<16xf32> to vector<16x1xf32>
    %c0_20 = arith.constant 0 : index
    %c0_21 = arith.constant 0 : index
    %25 = vector.load %arg9[%c0_20, %c0_21] : memref<1x1xf32, #tpu.memory_space<vmem>>, vector<1x1xf32>
    %26 = vector.broadcast %25 : vector<1x1xf32> to vector<16x1xf32>
    %27 = arith.addf %24, %26 : vector<16x1xf32>
    %28 = arith.negf %27 : vector<16x1xf32>
    %29 = math.exp %28 : vector<16x1xf32>
    %cst_22 = arith.constant 1.000000e+00 : f32
    %30 = vector.broadcast %cst_22 : f32 to vector<16x1xf32>
    %31 = arith.addf %30, %29 : vector<16x1xf32>
    %32 = arith.divf %30, %31 : vector<16x1xf32>
    %cst_23 = arith.constant 4.000000e+00 : f32
    %33 = vector.broadcast %cst_23 : f32 to vector<16x1xf32>
    %34 = arith.mulf %32, %33 : vector<16x1xf32>
    %cst_24 = arith.constant 1.000000e+00 : f32
    %35 = vector.broadcast %cst_24 : f32 to vector<16x1xf32>
    %36 = arith.addf %34, %35 : vector<16x1xf32>
    %37 = vector.shape_cast %36 : vector<16x1xf32> to vector<1x1x16xf32>
    %c0_25 = arith.constant 0 : index
    %c0_26 = arith.constant 0 : index
    %c0_27 = arith.constant 0 : index
    %38 = vector.load %arg10[%c0_25, %c0_26, %c0_27] : memref<1x1x16xf32, #tpu.memory_space<vmem>>, vector<1x1x16xf32>
    tpu.vector_store %arg10[%c0_25, %c0_26, %c0_27], %37 {strides = array<i32>} : memref<1x1x16xf32, #tpu.memory_space<vmem>>, vector<1x1x16xf32>,
    return
  }
  func.func @transform_0(%arg0: i32) -> (i32, i32) {
    %c0_i32 = arith.constant 0 : i32
    %c0_i32_0 = arith.constant 0 : i32
    return %arg0, %c0_i32 : i32, i32
  }
  func.func @transform_1(%arg0: i32) -> (i32, i32) {
    %c0_i32 = arith.constant 0 : i32
    %c0_i32_0 = arith.constant 0 : i32
    return %arg0, %c0_i32 : i32, i32
  }
  func.func @transform_2(%arg0: i32) -> (i32, i32) {
    %c0_i32 = arith.constant 0 : i32
    %c0_i32_0 = arith.constant 0 : i32
    %c0_i32_1 = arith.constant 0 : i32
    return %c0_i32, %c0_i32_0 : i32, i32
  }
  func.func @transform_3(%arg0: i32) -> (i32, i32) {
    %c0_i32 = arith.constant 0 : i32
    %c0_i32_0 = arith.constant 0 : i32
    %c0_i32_1 = arith.constant 0 : i32
    return %c0_i32, %c0_i32_0 : i32, i32
  }
  func.func @transform_4(%arg0: i32) -> (i32, i32) {
    %c0_i32 = arith.constant 0 : i32
    %c0_i32_0 = arith.constant 0 : i32
    %c0_i32_1 = arith.constant 0 : i32
    return %c0_i32, %c0_i32_0 : i32, i32
  }
  func.func @transform_5(%arg0: i32) -> (i32, i32) {
    %c0_i32 = arith.constant 0 : i32
    %c0_i32_0 = arith.constant 0 : i32
    %c0_i32_1 = arith.constant 0 : i32
    return %c0_i32, %c0_i32_0 : i32, i32
  }
  func.func @transform_6(%arg0: i32) -> (i32, i32) {
    %c0_i32 = arith.constant 0 : i32
    %c0_i32_0 = arith.constant 0 : i32
    %c0_i32_1 = arith.constant 0 : i32
    return %c0_i32, %c0_i32_0 : i32, i32
  }
  func.func @transform_7(%arg0: i32) -> (i32, i32) {
    %c0_i32 = arith.constant 0 : i32
    %c0_i32_0 = arith.constant 0 : i32
    %c0_i32_1 = arith.constant 0 : i32
    return %c0_i32, %c0_i32_0 : i32, i32
  }
  func.func @transform_8(%arg0: i32) -> (i32, i32) {
    %c0_i32 = arith.constant 0 : i32
    %c0_i32_0 = arith.constant 0 : i32
    %c0_i32_1 = arith.constant 0 : i32
    return %c0_i32, %c0_i32_0 : i32, i32
  }
  func.func @transform_9(%arg0: i32) -> (i32, i32, i32) {
    %c0_i32 = arith.constant 0 : i32
    %c0_i32_0 = arith.constant 0 : i32
    %c0_i32_1 = arith.constant 0 : i32
    return %arg0, %c0_i32, %c0_i32_0 : i32, i32, i32
  }
}

</mosaic_0001>

<bundles_post_ra>
// kernel: tpu_custom_call.1
= control target key start
LH: loop header
LB: loop body
LE: loop exit
PB: predicated region body
PF: predicated region fallthrough
CT: control target
= control target key end

     0   :  { %s656_s0 = inlined_call_operand.vmem [shape: bf16[16,128], index: 0, kind: input, shape index: {}]   ;;  %s657_s1 = inlined_call_operand.vmem [shape: bf16[16,128], index: 1, kind: input, shape index: {}]   ;;  %s658_s2 = inlined_call_operand.vmem [shape: bf16[128,64], index: 2, kind: input, shape index: {}]   ;;  %s659_s3 = inlined_call_operand.vmem [shape: bf16[128,64], index: 3, kind: input, shape index: {}]   ;;  %s660_s4 = inlined_call_operand.vmem [shape: f32[1,64], index: 4, kind: input, shape index: {}]   ;;  %s661_s5 = inlined_call_operand.vmem [shape: bf16[64,32], index: 5, kind: input, shape index: {}]   ;;  %s662_s6 = inlined_call_operand.vmem [shape: f32[1,32], index: 6, kind: input, shape index: {}]   ;;  %s663_s7 = inlined_call_operand.vmem [shape: f32[1,32], index: 7, kind: input, shape index: {}]   ;;  %s664_s8 = inlined_call_operand.<no memory space> [shape: f32[1,1], index: 8, kind: input, shape index: {}]   ;;  %s665_s9 = inlined_call_operand.hbm [shape: f32[1,1,16], index: 9, kind: output, shape index: {}]  }
   0x1   :  { %v14_v0 = vstv %s664_s8 }
   0x2   :  { %15 = vst [vmem:[#allocation2] sm:$0x1] %v14_v0 }
   0x3   :  { %v476_v1 = vld [vmem:[%s659_s3 + $0x38] sm:$0xff]  ;;  %v475_v3 = vld [vmem:[%s659_s3 + $0x30] sm:$0xff]  ;;  %v474_v5 = vld [vmem:[%s659_s3 + $0x28] sm:$0xff] }
   0x4   :  { %v467_v2 = vld [vmem:[%s658_s2 + $0x38] sm:$0xff]  ;;  %126 = vmatpush.bf16.msra.mxu0 %v476_v1  ;;  %v466_v4 = vld [vmem:[%s658_s2 + $0x30] sm:$0xff]  ;;  %v465_v6 = vld [vmem:[%s658_s2 + $0x28] sm:$0xff] }
   0x5   :  { %194 = vmatpush.bf16.msra.mxu1 %v467_v2 }
   0x8   :  { %127 = vmatpush.bf16.msra.mxu0 %v475_v3 }
   0x9   :  { %195 = vmatpush.bf16.msra.mxu1 %v466_v4 }
   0xa   :  { %16 = vsyncpa [#allocation4], 0  ;;  %v473_v7 = vld [vmem:[%s659_s3 + $0x20] sm:$0xff]  ;;  %v472_v9 = vld [vmem:[%s659_s3 + $0x18] sm:$0xff]  ;;  %vm253_vm0 = vcmask 523264   ;;  %vm279_vm1 = vcmask 261120  }
   0xb   :  { %v464_v8 = vld [vmem:[%s658_s2 + $0x20] sm:$0xff]  ;;  %v463_v10 = vld [vmem:[%s658_s2 + $0x18] sm:$0xff]  ;;  %v471_v11 = vld [vmem:[%s659_s3 + $0x10] sm:$0xff]  ;;  %v523_v48 = vmov 0   ;;  %s359_s13 = sshll.u32 %s665_s9, 4  ;;  %vm347_vm10 = vcmask 130112   ;;  %s360_s13 = int_to_ptr.hbm [resolvable:$true] %s359_s13 }
   0xc   :  { %128 = vmatpush.bf16.msra.mxu0 %v474_v5  ;;  %v462_v12 = vld [vmem:[%s658_s2 + $0x10] sm:$0xff]  ;;  %v470_v13 = vld [vmem:[%s659_s3 + $0x8] sm:$0xff]  ;;  %v469_v15 = vld [vmem:[%s659_s3] sm:$0xff]  ;;  %483 = vset.pattern.permute.xlu1 %v523_v48  ;;  %vm350_vm11 = vcmask 122880  }
   0xd   :  { %196 = vmatpush.bf16.msra.mxu1 %v465_v6  ;;  %v461_v14 = vld [vmem:[%s658_s2 + $0x8] sm:$0xff]  ;;  %v460_v16 = vld [vmem:[%s658_s2] sm:$0xff]  ;;  %v480_v19 = vld [vmem:[%s661_s5 + $0x18] sm:$0xff]  ;;  %484 = vset.pattern.permute.xlu0 %v523_v48 }
   0xe   :  { %v468_v17 = vld [vmem:[%s657_s1] sm:$0xff]  ;;  %261 = vmatpush.bf16.msra.mxu2 %v480_v19  ;;  %v479_v20 = vld [vmem:[%s661_s5 + $0x10] sm:$0xff]  ;;  %v478_v21 = vld [vmem:[%s661_s5 + $0x8] sm:$0xff]  ;;  %v342_v19 = vlaneseq }
   0xf   :  { %v459_v18 = vld [vmem:[%s656_s0] sm:$0xff] }
  0x10   :  { %129 = vmatpush.bf16.msra.mxu0 %v473_v7  ;;  %v477_v22 = vld [vmem:[%s661_s5] sm:$0xff] }
  0x11   :  { %197 = vmatpush.bf16.msra.mxu1 %v464_v8  ;;  %v485_v26 = vld [vmem:[%s660_s4] ss:$0 sm:$0xff]  ;;  %s524_s4 = smov [#allocation3]  }
  0x12   :  { %262 = vmatpush.bf16.msra.mxu2 %v479_v20  ;;  %v486_v35 = vld [vmem:[%s662_s6] ss:$0 sm:$0xff]  ;;  %s357_s6 = sshll.u32 %s524_s4, 4  ;;  %s358_s6 = int_to_ptr.vmem [resolvable:$true] %s357_s6 }
  0x13   :  { %v487_v38 = vld [vmem:[%s663_s7] ss:$0 sm:$0xff] }
  0x14   :  { %130 = vmatpush.bf16.msra.mxu0 %v472_v9  ;;  %v488_v47 = vld [vmem:[#allocation2] ss:$0 sm:$0xff] }
  0x15   :  { %198 = vmatpush.bf16.msra.mxu1 %v463_v10 }
  0x16   :  { %263 = vmatpush.bf16.msra.mxu2 %v478_v21  ;;  %v343_v21 = vand.u32 127, %v342_v19 }
  0x18   :  { %131 = vmatpush.bf16.msra.mxu0 %v471_v11 }
  0x19   :  { %199 = vmatpush.bf16.msra.mxu1 %v462_v12 }
  0x1a   :  { %264 = vmatpush.bf16.msra.mxu2 %v477_v22  ;;  %v345_v22 = vadd.s32 4294967288, %v343_v21 }
  0x1c   :  { %132 = vmatpush.bf16.msra.mxu0 %v470_v13 }
  0x1d   :  { %200 = vmatpush.bf16.msra.mxu1 %v461_v14 }
  0x20   :  { %133 = vmatpush.bf16.msra.mxu0 %v469_v15 }
  0x21   :  { %201 = vmatpush.bf16.msra.mxu1 %v460_v16 }
  0x23   :  { %134 = vmatmul.bf16.vlgmr.msra.gmra.mxu0 %v468_v17 }
  0x24   :  { %202 = vmatmul.bf16.vlgmr.msra.gmra.mxu1 %v459_v18 }
  0xa0   :  { %v135_v23 = vpop.f32.mrf.mxu0 }
  0xa1   :  { %v203_v24 = vpop.f32.mrf.mxu1 }
  0xa2   :  { %v204_v25 = vadd.f32 %v203_v24, %v135_v23 }
  0xa4   :  { %v212_v29 = vadd.f32 %v485_v26, %v204_v25 }
  0xa6   :  { %v214_v32 = vmax.f32 %v212_v29, 0.0 }
  0xa8   :  { %v137_v27 = vpop.f32.mrf.mxu0 }
  0xa9   :  { %v205_v28 = vpop.f32.mrf.mxu1 }
  0xaa   :  { %v206_v30 = vadd.f32 %v205_v28, %v137_v27 }
  0xac   :  { %v213_v31 = vadd.f32 %v485_v26, %v206_v30 }
  0xae   :  { %v215_v33 = vmax.f32 %v213_v31, 0.0 }
  0xb0   :  { %v216_v34 = vpack.c.bf16 %v215_v33, %v214_v32 }
  0xb2   :  { %456 = vmatmul.msk.bf16.vlgmr.msra.gmra.mxu2 %vm253_vm0, %v216_v34 }
 0x135   :  { %v266_v36 = vpop.f32.mrf.mxu2 }
 0x136   :  { %v267_v37 = vadd.f32 %v486_v35, %v266_v36 }
 0x138   :  { %v271_v39 = vmax.f32 %v267_v37, 0.0 }
 0x13a   :  { %v277_v40 = vmul.f32 %v487_v38, %v271_v39 }
 0x13c   :  { %v280_v41 = vsel %vm279_vm1, %v277_v40, 0.0 }
 0x13d   :  { %v268_v42 = vpop.f32.mrf.mxu2  ;;  %281 = vadd.xlane.f32.xlu0 %v280_v41 }
 0x13e   :  { %v269_v43 = vadd.f32 %v486_v35, %v268_v42 }
 0x140   :  { %v272_v44 = vmax.f32 %v269_v43, 0.0 }
 0x142   :  { %v278_v45 = vmul.f32 %v487_v38, %v272_v44 }
 0x144   :  { %v283_v46 = vsel %vm279_vm1, %v278_v45, 0.0 }
 0x145   :  { %284 = vadd.xlane.f32.xlu0 %v283_v46 }
 0x1b0   :  { %v282_v49 = vpop.xlane.xlu0 %281 }
 0x1b1   :  { %v290_v50 = vadd.f32 %v488_v47, %v282_v49 }
 0x1b3   :  { %v457_v51 = vmul.f32 -1.442695, %v290_v50 }
 0x1b5   :  { %489 = vpow2.f32 %v457_v51 }
 0x1b8   :  { %v285_v52 = vpop.xlane.xlu0 %284 }
 0x1b9   :  { %v291_v53 = vadd.f32 %v488_v47, %v285_v52 }
 0x1bb   :  { %v490_v54 = vpop.eup %489  ;;  %v458_v55 = vmul.f32 -1.442695, %v291_v53 }
 0x1bc   :  { %v298_v56 = vadd.f32 1.0, %v490_v54 }
 0x1bd   :  { %491 = vpow2.f32 %v458_v55 }
 0x1be   :  { %493 = vrcp.f32 %v298_v56  ;;  %v311_v62 = vand.u32 2147483648, %v298_v56  ;;  %v309_v0 = vand.u32 2147483647, %v298_v56  ;;  %vm305_vm3 = vweird.f32 %v298_v56 }
 0x1c0   :  { %v312_v3 = vor.u32 1.1754944e-38, %v311_v62  ;;  %vm310_vm5 = vcmp.eq.f32.partialorder %v309_v0, 8.507059e+37 }
 0x1c3   :  { %v492_v57 = vpop.eup %491 }
 0x1c4   :  { %v494_v58 = vpop.eup %493  ;;  %v299_v59 = vadd.f32 1.0, %v492_v57 }
 0x1c5   :  { %v301_v60 = vmul.f32 %v494_v58, %v298_v56  ;;  %vm306_vm2 = vweird.f32 %v494_v58 }
 0x1c6   :  { %495 = vrcp.f32 %v299_v59  ;;  %vm307_vm4 = vmor %vm305_vm3, %vm306_vm2  ;;  %v326_v9 = vand.u32 2147483648, %v299_v59  ;;  %v324_v12 = vand.u32 2147483647, %v299_v59  ;;  %vm320_vm7 = vweird.f32 %v299_v59 }
 0x1c7   :  { %v302_v61 = vsub.f32 1.0, %v301_v60 }
 0x1c8   :  { %v327_v14 = vor.u32 1.1754944e-38, %v326_v9  ;;  %vm325_vm9 = vcmp.eq.f32.partialorder %v324_v12, 8.507059e+37 }
 0x1c9   :  { %v303_v63 = vmul.f32 %v494_v58, %v302_v61 }
 0x1cb   :  { %v304_v1 = vadd.f32 %v494_v58, %v303_v63 }
 0x1cc   :  { %v496_v2 = vpop.eup %495 }
 0x1cd   :  { %v316_v4 = vmul.f32 %v496_v2, %v299_v59  ;;  %v308_v5 = vsel %vm307_vm4, %v494_v58, %v304_v1  ;;  %vm321_vm6 = vweird.f32 %v496_v2 }
 0x1ce   :  { %v313_v6 = vsel %vm310_vm5, %v312_v3, %v308_v5  ;;  %vm322_vm8 = vmor %vm320_vm7, %vm321_vm6 }
 0x1cf   :  { %v330_v7 = vmul.f32 4.0, %v313_v6  ;;  %v317_v8 = vsub.f32 1.0, %v316_v4 }
 0x1d1   :  { %v332_v10 = vadd.f32 1.0, %v330_v7  ;;  %v318_v11 = vmul.f32 %v496_v2, %v317_v8 }
 0x1d3   :  { %337 = vperm.xlu1 %483, %v332_v10   ;;  %v319_v13 = vadd.f32 %v496_v2, %v318_v11 }
 0x1d5   :  { %v323_v15 = vsel %vm322_vm8, %v496_v2, %v319_v13 }
 0x1d6   :  { %v328_v16 = vsel %vm325_vm9, %v327_v14, %v323_v15 }
 0x1d7   :  { %v331_v17 = vmul.f32 4.0, %v328_v16 }
 0x1d9   :  { %v333_v18 = vadd.f32 1.0, %v331_v17 }
 0x1db   :  { %340 = vperm.xlu1 %483, %v333_v18  }
 0x245   :  { %v338_v20 = vpop.permute.xlu1 %337 }
 0x246   :  { %v344_v24 = vperm.slane %v338_v20, %v343_v21 }
 0x24d   :  { %v341_v23 = vpop.permute.xlu1 %340 }
 0x24e   :  { %v346_v25 = vperm.slane %v341_v23, %v345_v22 }
 0x250   :  { %v348_v26 = vsel %vm347_vm10, %v346_v25, %v344_v24 }
 0x251   :  { %351 = vst.msk [vmem:[#allocation3] sm:$0x1] %vm350_vm11, %v348_v26 }
 0x252   :  { %362 = dma.vmem_to_hbm [thread:$0]  %s358_s6, 16, %s360_s13, [#allocation4]  }
 0x253   :  { %521 = dma.done.wait [#allocation4], 16  }
 0x254   :  { %522 = vsyncadd [#allocation4], 4294967280 }
 0x255   :  { %367 = vsyncpa [#allocation4], 1 }

</bundles_post_ra>
